<compile_context>
chip_gen: v5e
topology: v5e:2x2
jax: 0.10.0
libtpu: 0.0.40
codegen_flags: <defaults>
</compile_context>

<pallas_src>
import functools

import jax
import jax.numpy as jnp
from jax.experimental import pallas as pl
from jax.experimental.pallas import tpu as pltpu


# ----------------------------------------------------------------------------
# Kernels
# ----------------------------------------------------------------------------

def _ssm_kernel_2d(*refs, n_inputs, in_channels, fuse_conv1):
    """MXU path. One (C, TN) pixel tile for one batch element.

    refs = (x_0..x_{K-1}, w1, b1, w2, b2, o)
      x_k : (C, TN)      input k, channels on sublanes, pixels on lanes
      w1  : (C, K*C)     if fuse_conv1 (col = k*C + c_in), else (K, C, C)
      b1  : (C, 1)       folded conv1 bias
      w2  : (K, C)       folded conv2 weight [k_out, c_in]
      b2  : (K, 1)       folded conv2 bias
      o   : (C, TN)      multiplexed output tile
    """
    K, C = n_inputs, in_channels
    x_refs = refs[:K]
    w1_ref, b1_ref, w2_ref, b2_ref, o_ref = refs[K:K + 5]

    xs = [x_refs[k][...].astype(jnp.float32) for k in range(K)]      # (C, TN)

    # ConvBlock 1: 1x1 conv over the K-major merged channels; + bias; ReLU.
    if fuse_conv1:
        # Single (C, K*C) @ (K*C, TN) dot — the K tiles are already in VMEM,
        # the sublane-aligned concat is cheap and cuts MXU streaming ~K-fold.
        xcat = jnp.concatenate(xs, axis=0)                           # (K*C, TN)
        acc = jnp.dot(w1_ref[...], xcat, preferred_element_type=jnp.float32)
    else:
        acc = jnp.dot(w1_ref[0], xs[0], preferred_element_type=jnp.float32)
        for k in range(1, K):
            acc = acc + jnp.dot(w1_ref[k], xs[k],
                                preferred_element_type=jnp.float32)
    h = jnp.maximum(acc + b1_ref[...], 0.0)                          # (C, TN)

    # ConvBlock 2: C -> K logits; + bias; ReLU.
    a = jnp.dot(w2_ref[...], h, preferred_element_type=jnp.float32) + b2_ref[...]
    a = jnp.maximum(a, 0.0)                                          # (K, TN)

    # Softmax over K as whole-array reductions (no (1, TN) row slicing).
    m = jnp.max(a, axis=0, keepdims=True)                            # (1, TN)
    e = jnp.exp(a - m)                                               # (K, TN)
    s = jnp.sum(e, axis=0, keepdims=True)                            # (1, TN)
    wgt = e * ((1.0 / K) / s)                # exact recip; 1/K mean folded in

    # Weighted mean over the K stacked feature maps.
    out = wgt[0:1] * xs[0]
    for k in range(1, K):
        out = out + wgt[k:k + 1] * xs[k]
    o_ref[...] = out.astype(o_ref.dtype)


def _ssm_kernel_slab(*refs, n_inputs, in_channels):
    """Small-C all-VPU path. One (C, 8, LN) slab tile for one batch element.

    Every (8, LN) channel slab is a dense set of vregs regardless of C; the
    1x1 convs are unrolled scalar-broadcast FMAs with scalar weights in SMEM.

    refs = (x_0..x_{K-1}, w1, b1, w2, b2, o)
      x_k : (C, 8, LN)   input k  (sublanes = 8 pixel chunks, lanes = pixels)
      w1  : (K*C*C,) f32 SMEM, flat [k, c_out, c_in]
      b1  : (C,)     f32 SMEM
      w2  : (K*C,)   f32 SMEM, flat [k_out, c_in]
      b2  : (K,)     f32 SMEM
      o   : (C, 8, LN)
    """
    K, C = n_inputs, in_channels
    x_refs = refs[:K]
    w1_ref, b1_ref, w2_ref, b2_ref, o_ref = refs[K:K + 5]

    # Load each (8, LN) channel slab once.
    xs = [[x_refs[k][c].astype(jnp.float32) for c in range(C)] for k in range(K)]

    # ConvBlock 1: K*C -> C, scalar-weight VPU FMAs; + bias; ReLU.
    hs = []
    for co in range(C):
        acc = xs[0][0] * w1_ref[co * C]                  # k=0, c_in=0 term
        for k in range(K):
            for ci in range(C):
                if k == 0 and ci == 0:
                    continue
                acc = acc + xs[k][ci] * w1_ref[k * C * C + co * C + ci]
        hs.append(jnp.maximum(acc + b1_ref[co], 0.0))    # (8, LN)

    # ConvBlock 2: C -> K logits; + bias; ReLU.
    logits = []
    for ko in range(K):
        acc = hs[0] * w2_ref[ko * C]
        for ci in range(1, C):
            acc = acc + hs[ci] * w2_ref[ko * C + ci]
        logits.append(jnp.maximum(acc + b2_ref[ko], 0.0))

    # Softmax over K (each operand is a dense (8, LN) slab — no row slicing).
    m = logits[0]
    for ko in range(1, K):
        m = jnp.maximum(m, logits[ko])
    es = [jnp.exp(l - m) for l in logits]
    s = es[0]
    for ko in range(1, K):
        s = s + es[ko]
    scale = (1.0 / K) / s                                # exact; mean folded in
    wgt = [e * scale for e in es]

    # Weighted mean over the K stacked feature maps.
    for co in range(C):
        acc = wgt[0] * xs[0][co]
        for k in range(1, K):
            acc = acc + wgt[k] * xs[k][co]
        o_ref[co] = acc.astype(o_ref.dtype)


# ----------------------------------------------------------------------------
# Wrapper: generation-aware tiling + layout selection
# ----------------------------------------------------------------------------

def _round_up(x, m):
    return (x + m - 1) // m * m


def _divisors(m):
    ds, i = set(), 1
    while i * i <= m:
        if m % i == 0:
            ds.add(i)
            ds.add(m // i)
        i += 1
    return sorted(ds)


def _chip_budget():
    """Per-generation (bytes/step target, I/O-VMEM budget, vmem limit, min grid steps)."""
    kind = ""
    try:
        kind = jax.devices()[0].device_kind.lower()
    except Exception:
        pass
    if "v7" in kind:
        # 2 TCs/chip, 3.2 TB/s HBM, only 64 MiB physical VMEM.
        target, io_budget, vmem_limit, min_steps = 4 << 20, 16 << 20, 40 << 20, 4
    elif ("v5 lite" in kind) or ("v5e" in kind) or ("v5lite" in kind):
        # 0.82 TB/s HBM; scoped-VMEM default is only 16 MiB of 128 MiB.
        target, io_budget, vmem_limit, min_steps = 2 << 20, 24 << 20, 64 << 20, 2
    else:
        # v6e / default: ~1.4 TB/s HBM, 128 MiB VMEM.
        target, io_budget, vmem_limit, min_steps = 2 << 20, 32 << 20, 80 << 20, 2
    try:
        cap = pltpu.get_tpu_info().vmem_capacity_bytes
        vmem_limit = min(vmem_limit, int(cap * 0.75))
    except Exception:
        pass
    return target, io_budget, vmem_limit, min_steps


def soft_spatial_multiplex(inp_list, w1, b1, w2, b2):
    """NCHW list -> Pallas kernel -> NCHW.  All data-layout work is free views
    except an explicit pad of the pixel axis for ragged HW.

    w1: (K*C, C) folded conv1 weight (Cin K-major, Cout) ; b1: (C,)
    w2: (C, K)   folded conv2 weight                      ; b2: (K,)
    """
    K = len(inp_list)
    B, C, H, W = inp_list[0].shape
    HW = H * W
    dtype = inp_list[0].dtype
    itemsize = jnp.dtype(dtype).itemsize

    target_bytes, io_budget, vmem_limit, min_steps = _chip_budget()

    # Small-C slab layout only when it gives dense (8, >=128) vregs without
    # excessive pixel padding, and inputs are 32-bit.
    use_slab = (C < 8 and itemsize == 4 and
                _round_up(HW, 1024) <= int(1.25 * _round_up(HW, 128)))
    align = 1024 if use_slab else 128
    hw_al = _round_up(HW, align)

    # --- pixel-tile (tn) selection -----------------------------------------
    bytes_per_px = (K + 1) * C * itemsize                      # HBM read+write
    vmem_per_px = 2 * (K + 1) * _round_up(C, 8) * 4            # double-buffered
    tn_target = max(align, (target_bytes // bytes_per_px) // align * align)
    tn_vmem = max(align, (io_budget // vmem_per_px) // align * align)
    tn_cap = min(tn_target, tn_vmem, hw_al)

    m = hw_al // align
    ok = [d * align for d in _divisors(m)
          if d * align <= tn_cap and B * (m // d) >= min_steps]
    anyc = [d * align for d in _divisors(m) if d * align <= tn_cap]
    tn = max(ok) if ok else max(anyc)                          # divides hw_al

    # --- inputs: free (B, C, HW) views; pad the pixel axis only if ragged ---
    xs = [x.reshape(B, C, HW) for x in inp_list]
    if hw_al != HW:
        xs = [jnp.pad(x, ((0, 0), (0, 0), (0, hw_al - HW))) for x in xs]

    cparams = pltpu.CompilerParams(
        dimension_semantics=("parallel", "parallel"),
        vmem_limit_bytes=vmem_limit)
    grid = (B, hw_al // tn)

    if use_slab:
        # ------------------------- small-C VPU path -------------------------
        L = hw_al // 8
        ln = tn // 8                                           # multiple of 128
        xs4 = [x.reshape(B, C, 8, L) for x in xs]              # free views
        # Flat SMEM weights: w1 [k, c_out, c_in], w2 [k_out, c_in].
        w1_flat = jnp.transpose(w1.reshape(K, C, C), (0, 2, 1)).reshape(-1)
        w2_flat = jnp.transpose(w2).reshape(-1)
        smem_spec = pl.BlockSpec(memory_space=pltpu.MemorySpace.SMEM)
        x_spec = pl.BlockSpec((None, C, 8, ln), lambda b, n: (b, 0, 0, n))

        kern = functools.partial(_ssm_kernel_slab, n_inputs=K, in_channels=C)
        out = pl.pallas_call(
            kern,
            out_shape=jax.ShapeDtypeStruct((B, C, 8, L), dtype),
            grid_spec=pltpu.PrefetchScalarGridSpec(
                num_scalar_prefetch=0,
                grid=grid,
                in_specs=[x_spec] * K + [smem_spec] * 4,
                out_specs=x_spec),
            compiler_params=cparams,
        )(*xs4, w1_flat, b1.astype(jnp.float32), w2_flat, b2.astype(jnp.float32))
        out = out.reshape(B, C, hw_al)[:, :, :HW]
        return out.reshape(B, C, H, W)

    # ------------------------------ MXU path --------------------------------
    fuse = (C >= 8) and (C % 8 == 0)
    if fuse:
        w1m = jnp.transpose(w1)                                # (C, K*C), col = k*C+ci
        w1_spec = pl.BlockSpec((C, K * C), lambda b, n: (0, 0))
    else:
        w1m = jnp.transpose(w1.reshape(K, C, C), (0, 2, 1))    # (K, C_out, C_in)
        w1_spec = pl.BlockSpec((K, C, C), lambda b, n: (0, 0, 0))
    b1c = b1.reshape(C, 1).astype(jnp.float32)
    w2t = jnp.transpose(w2)                                    # (K, C)
    b2c = b2.reshape(K, 1).astype(jnp.float32)

    x_spec = pl.BlockSpec((None, C, tn), lambda b, n: (b, 0, n))
    kern = functools.partial(_ssm_kernel_2d, n_inputs=K, in_channels=C,
                             fuse_conv1=fuse)
    out = pl.pallas_call(
        kern,
        out_shape=jax.ShapeDtypeStruct((B, C, hw_al), dtype),
        grid_spec=pltpu.PrefetchScalarGridSpec(
            num_scalar_prefetch=0,
            grid=grid,
            in_specs=[x_spec] * K + [
                w1_spec,
                pl.BlockSpec((C, 1), lambda b, n: (0, 0)),
                pl.BlockSpec((K, C), lambda b, n: (0, 0)),
                pl.BlockSpec((K, 1), lambda b, n: (0, 0)),
            ],
            out_specs=x_spec),
        compiler_params=cparams,
    )(*xs, w1m, b1c, w2t, b2c)
    return out[:, :, :HW].reshape(B, C, H, W)


# ----------------------------------------------------------------------------
# Parameters, reference, tests
# ----------------------------------------------------------------------------

def _fold_bn(w, b, gamma, beta, mean, var, eps=1e-5):
    """Fold eval-mode BatchNorm into a 1x1 conv expressed as (Cin, Cout) matmul."""
    scale = gamma / jnp.sqrt(var + eps)                 # (Cout,)
    w_f = w * scale[None, :]                            # (Cin, Cout)
    b_f = (b - mean) * scale + beta                     # (Cout,)
    return w_f, b_f


def init_params(key, n_inputs, in_channels):
    """Deterministic synthetic parameters for attn = ConvBlock, ConvBlock."""
    K, C = n_inputs, in_channels
    k1, k2, k3, k4 = jax.random.split(key, 4)

    w1 = jax.random.normal(k1, (K * C, C), jnp.float32) * 0.2
    b1 = jax.random.normal(k2, (C,), jnp.float32) * 0.1
    g1 = jnp.linspace(0.8, 1.2, C, dtype=jnp.float32)
    be1 = jnp.linspace(-0.05, 0.05, C, dtype=jnp.float32)
    m1 = jnp.linspace(-0.1, 0.1, C, dtype=jnp.float32)
    v1 = jnp.linspace(0.9, 1.1, C, dtype=jnp.float32)
    w1f, b1f = _fold_bn(w1, b1, g1, be1, m1, v1)

    w2 = jax.random.normal(k3, (C, K), jnp.float32) * 0.2
    b2 = jax.random.normal(k4, (K,), jnp.float32) * 0.1
    g2 = jnp.linspace(0.9, 1.1, K, dtype=jnp.float32)
    be2 = jnp.linspace(-0.02, 0.02, K, dtype=jnp.float32)
    m2 = jnp.linspace(-0.05, 0.05, K, dtype=jnp.float32)
    v2 = jnp.linspace(0.95, 1.05, K, dtype=jnp.float32)
    w2f, b2f = _fold_bn(w2, b2, g2, be2, m2, v2)

    return w1f, b1f, w2f, b2f


def reference(inp_list, w1, b1, w2, b2):
    """Pure-JAX reference matching the PyTorch forward (NCHW)."""
    K = len(inp_list)
    B, C, H, W = inp_list[0].shape
    hi = jax.lax.Precision.HIGHEST
    stacked = jnp.stack(inp_list, axis=1)                  # (B, K, C, H, W)
    x = stacked.reshape(B, K * C, H, W)                    # view(B, -1, H, W)
    h = jnp.einsum("bihw,io->bohw", x, w1, precision=hi) + b1.reshape(1, C, 1, 1)
    h = jnp.maximum(h, 0.0)
    a = jnp.einsum("bihw,io->bohw", h, w2, precision=hi) + b2.reshape(1, K, 1, 1)
    a = jnp.maximum(a, 0.0)
    wgt = jax.nn.softmax(a, axis=1)                        # softmax over K
    out = jnp.mean(wgt[:, :, None, :, :] * stacked, axis=1)
    return out


def _run_case(key, K, C, B, H, W, tol):
    kp, kx = jax.random.split(key)
    w1, b1, w2, b2 = init_params(kp, K, C)
    xkeys = jax.random.split(kx, K)
    inp_list = [jax.random.normal(xkeys[k], (B, C, H, W), jnp.float32)
                for k in range(K)]
    out = jax.block_until_ready(soft_spatial_multiplex(inp_list, w1, b1, w2, b2))
    ref = jax.block_until_ready(reference(inp_list, w1, b1, w2, b2))
    assert out.shape == (B, C, H, W)
    err = float(jnp.max(jnp.abs(out - ref)))
    assert bool(jnp.allclose(out, ref, atol=tol, rtol=tol)), (
        f"mismatch K={K} C={C} B={B} H={H} W={W}: max abs err {err}")


if __name__ == "__main__":
    key = jax.random.PRNGKey(0)
    keys = jax.random.split(key, 5)
    # (K, C, B, H, W, tol).  MXU cases use a looser tolerance only because TPU
    # f32 matmul passes differ slightly from the HIGHEST-precision reference.
    cases = [
        (3, 4, 2, 16, 16, 2e-3),   # small demo: 2-D layout, per-k MXU dots
        (3, 4, 1, 64, 64, 1e-4),   # small-C slab path (dense (8,128) vregs, VPU)
        (2, 8, 1, 16, 24, 2e-3),   # C>=8: fused (C, K*C) @ (K*C, TN) conv1 dot
        (2, 4, 2, 10, 10, 2e-3),   # ragged HW=100 -> padded to 128 (2-D layout)
        (3, 4, 1, 50, 50, 1e-4),   # ragged HW=2500 -> padded to 3072, slab path
    ]
    for kk, case in zip(keys, cases):
        _run_case(kk, *case)
    print("KERNEL_OK")
</pallas_src>

<mosaic_0001>
module attributes {stable_mosaic.version = 11 : i64} {
  func.func @_ssm_kernel_2d(%arg0: i32, %arg1: i32, %arg2: memref<1x4x256xf32, #tpu.memory_space<vmem>>, %arg3: memref<1x4x256xf32, #tpu.memory_space<vmem>>, %arg4: memref<1x4x256xf32, #tpu.memory_space<vmem>>, %arg5: memref<3x4x4xf32, #tpu.memory_space<vmem>>, %arg6: memref<4x1xf32, #tpu.memory_space<vmem>>, %arg7: memref<3x4xf32, #tpu.memory_space<vmem>>, %arg8: memref<3x1xf32, #tpu.memory_space<vmem>>, %arg9: memref<1x4x256xf32, #tpu.memory_space<vmem>>) attributes {dimension_semantics = [#tpu.dimension_semantics<parallel>, #tpu.dimension_semantics<parallel>], iteration_bounds = array<i64: 2, 1>, scalar_prefetch = 0 : i64, scratch_operands = 0 : i64, tpu.core_type = #tpu.core_type<tc>, window_params = [{transform_indices = @transform_0, window_bounds = array<i64: 1, 4, 256>}, {transform_indices = @transform_1, window_bounds = array<i64: 1, 4, 256>}, {transform_indices = @transform_2, window_bounds = array<i64: 1, 4, 256>}, {pipeline_mode = #tpu.pipeline_mode<synchronous>, transform_indices = @transform_3, window_bounds = array<i64: 3, 4, 4>}, {pipeline_mode = #tpu.pipeline_mode<synchronous>, transform_indices = @transform_4, window_bounds = array<i64: 4, 1>}, {pipeline_mode = #tpu.pipeline_mode<synchronous>, transform_indices = @transform_5, window_bounds = array<i64: 3, 4>}, {pipeline_mode = #tpu.pipeline_mode<synchronous>, transform_indices = @transform_6, window_bounds = array<i64: 3, 1>}, {transform_indices = @transform_7, window_bounds = array<i64: 1, 4, 256>}]} {
    %c0 = arith.constant 0 : index
    %c0_0 = arith.constant 0 : index
    %c0_1 = arith.constant 0 : index
    %0 = vector.load %arg2[%c0, %c0_0, %c0_1] : memref<1x4x256xf32, #tpu.memory_space<vmem>>, vector<1x4x256xf32>
    %1 = vector.shape_cast %0 : vector<1x4x256xf32> to vector<4x256xf32>
    %c0_2 = arith.constant 0 : index
    %c0_3 = arith.constant 0 : index
    %c0_4 = arith.constant 0 : index
    %2 = vector.load %arg3[%c0_2, %c0_3, %c0_4] : memref<1x4x256xf32, #tpu.memory_space<vmem>>, vector<1x4x256xf32>
    %3 = vector.shape_cast %2 : vector<1x4x256xf32> to vector<4x256xf32>
    %c0_5 = arith.constant 0 : index
    %c0_6 = arith.constant 0 : index
    %c0_7 = arith.constant 0 : index
    %4 = vector.load %arg4[%c0_5, %c0_6, %c0_7] : memref<1x4x256xf32, #tpu.memory_space<vmem>>, vector<1x4x256xf32>
    %5 = vector.shape_cast %4 : vector<1x4x256xf32> to vector<4x256xf32>
    %c0_8 = arith.constant 0 : index
    %c0_9 = arith.constant 0 : index
    %c0_10 = arith.constant 0 : index
    %6 = vector.load %arg5[%c0_8, %c0_9, %c0_10] : memref<3x4x4xf32, #tpu.memory_space<vmem>>, vector<1x4x4xf32>
    %7 = vector.shape_cast %6 : vector<1x4x4xf32> to vector<4x4xf32>
    %cst = arith.constant dense<0.000000e+00> : vector<4x256xf32>
    %8 = tpu.matmul %7, %1, %cst {dimension_numbers = #tpu.dot_dimension_numbers<[1], [0], [0], [1], [0, 0, 1, 1], [], []>} : vector<4x4xf32>, vector<4x256xf32>, vector<4x256xf32> -> vector<4x256xf32>
    %c1 = arith.constant 1 : index
    %c0_11 = arith.constant 0 : index
    %c0_12 = arith.constant 0 : index
    %9 = vector.load %arg5[%c1, %c0_11, %c0_12] : memref<3x4x4xf32, #tpu.memory_space<vmem>>, vector<1x4x4xf32>
    %10 = vector.shape_cast %9 : vector<1x4x4xf32> to vector<4x4xf32>
    %cst_13 = arith.constant dense<0.000000e+00> : vector<4x256xf32>
    %11 = tpu.matmul %10, %3, %cst_13 {dimension_numbers = #tpu.dot_dimension_numbers<[1], [0], [0], [1], [0, 0, 1, 1], [], []>} : vector<4x4xf32>, vector<4x256xf32>, vector<4x256xf32> -> vector<4x256xf32>
    %12 = arith.addf %8, %11 : vector<4x256xf32>
    %c2 = arith.constant 2 : index
    %c0_14 = arith.constant 0 : index
    %c0_15 = arith.constant 0 : index
    %13 = vector.load %arg5[%c2, %c0_14, %c0_15] : memref<3x4x4xf32, #tpu.memory_space<vmem>>, vector<1x4x4xf32>
    %14 = vector.shape_cast %13 : vector<1x4x4xf32> to vector<4x4xf32>
    %cst_16 = arith.constant dense<0.000000e+00> : vector<4x256xf32>
    %15 = tpu.matmul %14, %5, %cst_16 {dimension_numbers = #tpu.dot_dimension_numbers<[1], [0], [0], [1], [0, 0, 1, 1], [], []>} : vector<4x4xf32>, vector<4x256xf32>, vector<4x256xf32> -> vector<4x256xf32>
    %16 = arith.addf %12, %15 : vector<4x256xf32>
    %c0_17 = arith.constant 0 : index
    %c0_18 = arith.constant 0 : index
    %17 = vector.load %arg6[%c0_17, %c0_18] : memref<4x1xf32, #tpu.memory_space<vmem>>, vector<4x1xf32>
    %18 = vector.broadcast %17 : vector<4x1xf32> to vector<4x256xf32>
    %19 = arith.addf %16, %18 : vector<4x256xf32>
    %cst_19 = arith.constant 0.000000e+00 : f32
    %20 = vector.broadcast %cst_19 : f32 to vector<4x256xf32>
    %21 = arith.maximumf %19, %20 : vector<4x256xf32>
    %c0_20 = arith.constant 0 : index
    %c0_21 = arith.constant 0 : index
    %22 = vector.load %arg7[%c0_20, %c0_21] : memref<3x4xf32, #tpu.memory_space<vmem>>, vector<3x4xf32>
    %cst_22 = arith.constant dense<0.000000e+00> : vector<3x256xf32>
    %23 = tpu.matmul %22, %21, %cst_22 {dimension_numbers = #tpu.dot_dimension_numbers<[1], [0], [0], [1], [0, 0, 1, 1], [], []>} : vector<3x4xf32>, vector<4x256xf32>, vector<3x256xf32> -> vector<3x256xf32>
    %c0_23 = arith.constant 0 : index
    %c0_24 = arith.constant 0 : index
    %24 = vector.load %arg8[%c0_23, %c0_24] : memref<3x1xf32, #tpu.memory_space<vmem>>, vector<3x1xf32>
    %25 = vector.broadcast %24 : vector<3x1xf32> to vector<3x256xf32>
    %26 = arith.addf %23, %25 : vector<3x256xf32>
    %cst_25 = arith.constant 0.000000e+00 : f32
    %27 = vector.broadcast %cst_25 : f32 to vector<3x256xf32>
    %28 = arith.maximumf %26, %27 : vector<3x256xf32>
    %cst_26 = arith.constant dense<0xFF800000> : vector<256xf32>
    %29 = vector.multi_reduction <maximumf>, %28, %cst_26 [0] : vector<3x256xf32> to vector<256xf32>
    %30 = vector.shape_cast %29 : vector<256xf32> to vector<1x256xf32>
    %31 = vector.broadcast %30 : vector<1x256xf32> to vector<3x256xf32>
    %32 = arith.subf %28, %31 : vector<3x256xf32>
    %33 = math.exp %32 : vector<3x256xf32>
    %cst_27 = arith.constant dense<0.000000e+00> : vector<256xf32>
    %34 = vector.multi_reduction <add>, %33, %cst_27 [0] : vector<3x256xf32> to vector<256xf32>
    %35 = vector.shape_cast %34 : vector<256xf32> to vector<1x256xf32>
    %cst_28 = arith.constant 0.333333343 : f32
    %36 = vector.broadcast %cst_28 : f32 to vector<1x256xf32>
    %37 = arith.divf %36, %35 : vector<1x256xf32>
    %38 = vector.broadcast %37 : vector<1x256xf32> to vector<3x256xf32>
    %39 = arith.mulf %33, %38 : vector<3x256xf32>
    %40 = vector.extract_strided_slice %39 {offsets = [0, 0], sizes = [1, 256], strides = [1, 1]} : vector<3x256xf32> to vector<1x256xf32>
    %41 = vector.broadcast %40 : vector<1x256xf32> to vector<4x256xf32>
    %42 = arith.mulf %41, %1 : vector<4x256xf32>
    %43 = vector.extract_strided_slice %39 {offsets = [1, 0], sizes = [1, 256], strides = [1, 1]} : vector<3x256xf32> to vector<1x256xf32>
    %44 = vector.broadcast %43 : vector<1x256xf32> to vector<4x256xf32>
    %45 = arith.mulf %44, %3 : vector<4x256xf32>
    %46 = arith.addf %42, %45 : vector<4x256xf32>
    %47 = vector.extract_strided_slice %39 {offsets = [2, 0], sizes = [1, 256], strides = [1, 1]} : vector<3x256xf32> to vector<1x256xf32>
    %48 = vector.broadcast %47 : vector<1x256xf32> to vector<4x256xf32>
    %49 = arith.mulf %48, %5 : vector<4x256xf32>
    %50 = arith.addf %46, %49 : vector<4x256xf32>
    %c0_29 = arith.constant 0 : index
    %c0_30 = arith.constant 0 : index
    %c0_31 = arith.constant 0 : index
    %51 = vector.load %arg9[%c0_29, %c0_30, %c0_31] : memref<1x4x256xf32, #tpu.memory_space<vmem>>, vector<1x4x256xf32>
    %52 = vector.shape_cast %51 : vector<1x4x256xf32> to vector<4x256xf32>
    %53 = vector.shape_cast %50 : vector<4x256xf32> to vector<1x4x256xf32>
    tpu.vector_store %arg9[%c0_29, %c0_30, %c0_31], %53 {strides = array<i32>} : memref<1x4x256xf32, #tpu.memory_space<vmem>>, vector<1x4x256xf32>,
    return
  }
  func.func @transform_0(%arg0: i32, %arg1: i32) -> (i32, i32, i32) {
    %c0_i32 = arith.constant 0 : i32
    %c0_i32_0 = arith.constant 0 : i32
    return %arg0, %c0_i32, %arg1 : i32, i32, i32
  }
  func.func @transform_1(%arg0: i32, %arg1: i32) -> (i32, i32, i32) {
    %c0_i32 = arith.constant 0 : i32
    %c0_i32_0 = arith.constant 0 : i32
    return %arg0, %c0_i32, %arg1 : i32, i32, i32
  }
  func.func @transform_2(%arg0: i32, %arg1: i32) -> (i32, i32, i32) {
    %c0_i32 = arith.constant 0 : i32
    %c0_i32_0 = arith.constant 0 : i32
    return %arg0, %c0_i32, %arg1 : i32, i32, i32
  }
  func.func @transform_3(%arg0: i32, %arg1: i32) -> (i32, i32, i32) {
    %c0_i32 = arith.constant 0 : i32
    %c0_i32_0 = arith.constant 0 : i32
    %c0_i32_1 = arith.constant 0 : i32
    %c0_i32_2 = arith.constant 0 : i32
    return %c0_i32, %c0_i32_0, %c0_i32_1 : i32, i32, i32
  }
  func.func @transform_4(%arg0: i32, %arg1: i32) -> (i32, i32) {
    %c0_i32 = arith.constant 0 : i32
    %c0_i32_0 = arith.constant 0 : i32
    %c0_i32_1 = arith.constant 0 : i32
    return %c0_i32, %c0_i32_0 : i32, i32
  }
  func.func @transform_5(%arg0: i32, %arg1: i32) -> (i32, i32) {
    %c0_i32 = arith.constant 0 : i32
    %c0_i32_0 = arith.constant 0 : i32
    %c0_i32_1 = arith.constant 0 : i32
    return %c0_i32, %c0_i32_0 : i32, i32
  }
  func.func @transform_6(%arg0: i32, %arg1: i32) -> (i32, i32) {
    %c0_i32 = arith.constant 0 : i32
    %c0_i32_0 = arith.constant 0 : i32
    %c0_i32_1 = arith.constant 0 : i32
    return %c0_i32, %c0_i32_0 : i32, i32
  }
  func.func @transform_7(%arg0: i32, %arg1: i32) -> (i32, i32, i32) {
    %c0_i32 = arith.constant 0 : i32
    %c0_i32_0 = arith.constant 0 : i32
    return %arg0, %c0_i32, %arg1 : i32, i32, i32
  }
}

</mosaic_0001>

<bundles_post_ra>
// kernel: tpu_custom_call.1
= control target key start
LH: loop header
LB: loop body
LE: loop exit
PB: predicated region body
PF: predicated region fallthrough
CT: control target
= control target key end

     0   :  { %s1558_s0 = inlined_call_operand.hbm [shape: f32[2,4,256], index: 0, kind: input, shape index: {}]   ;;  %s1559_s1 = inlined_call_operand.hbm [shape: f32[2,4,256], index: 1, kind: input, shape index: {}]   ;;  %s1560_s2 = inlined_call_operand.hbm [shape: f32[2,4,256], index: 2, kind: input, shape index: {}]   ;;  %s1561_s3 = inlined_call_operand.hbm [shape: f32[3,4,4], index: 3, kind: input, shape index: {}]   ;;  %s1562_s4 = inlined_call_operand.vmem [shape: f32[4,1], index: 4, kind: input, shape index: {}]   ;;  %s1563_s5 = inlined_call_operand.vmem [shape: f32[3,4], index: 5, kind: input, shape index: {}]   ;;  %s1564_s6 = inlined_call_operand.vmem [shape: f32[3,1], index: 6, kind: input, shape index: {}]   ;;  %s1565_s7 = inlined_call_operand.hbm [shape: f32[2,4,256], index: 7, kind: output, shape index: {}]  }
   0x1   :  { %1575 = sst [smem:[#allocation22_spill]] %s1559_s1 }
   0x2   :  { %1576 = sst [smem:[#allocation23_spill]] %s1561_s3 }
   0x3   :  { %12 = vsyncpa [#allocation3], 0 }
   0x4   :  { %14 = vsyncpa [#allocation3 + $0x1], 0 }
   0x5   :  { %15 = vsyncpa [#allocation6], 0 }
   0x6   :  { %17 = vsyncpa [#allocation6 + $0x1], 0 }
   0x7   :  { %18 = vsyncpa [#allocation9], 0 }
   0x8   :  { %19 = vsyncpa [#allocation4], 0 }
   0x9   :  { %21 = vsyncpa [#allocation4 + $0x1], 0  ;;  %s1316_s24 = smov 0   ;;  %s1318_s25 = smov 0  }
   0xa   :  { %s1320_s26 = smov 0   ;;  %s1322_s27 = smov 0  }
   0xb   :  { %s1324_s28 = smov 0   ;;  %s1326_s29 = smov 0  }
   0xc LB: > { %1577 = sst [smem:[#allocation15_spill]] %s1250_s24  ;;  %s1347_s30 = sadd.s32 4294967295, %s1270_s29   ;;  %s1270_s29 = sphi %s1326_s29, %s27_s29   ;;  %s1266_s28 = sphi %s1324_s28, %s1599_s28   ;;  %s1262_s27 = sphi %s1322_s27, %s1598_s27   ;;  %s1258_s26 = sphi %s1320_s26, %s1602_s26   ;;  %s1254_s25 = sphi %s1318_s25, %s1601_s25   ;;  %s1250_s24 = sphi %s1316_s24, %s1600_s24  }
   0xd   : > { %1578 = sst [smem:[#allocation16_spill]] %s1266_s28  ;;  %s921_s8 = sadd.s32 4294967294, %s1270_s29  }
   0xe   : > { %1579 = sst [smem:[#allocation17_spill]] %s1270_s29  ;;  %s39_s9 = sadd.s32 1, %s1266_s28 }
   0xf   : > { %s48_s10 = sadd.s32 1, %s1258_s26  ;;  %p41_p0 = scmp.ge.s32.totalorder %s39_s9, 2 }
  0x10   : > { %p55_p1 = scmp.ne.s32.totalorder %s1258_s26, %s1254_s25  ;;  %p56_p2 = scmp.eq.s32.totalorder %s1270_s29, 0 }
  0x11   : > { %p61_p3 = scmp.ne.s32.totalorder %s1254_s25, %s1250_s24  ;;  %s1604_s9 = smov (%p41_p0, %s39_s9), 0 }
  0x12   : > { %1580 = sst [smem:[#allocation18_spill]] %s1604_s9  ;;  %p1359_p4 = por %p56_p2, %p55_p1 }
  0x13   : > { %p227_p5 = scmp.eq.s32.totalorder %s1347_s30, 1  ;;  %s43_s12 = ssub.s32 %s1266_s28, %s1604_s9 }
  0x14   : > { %p233_p6 = scmp.eq.s32.totalorder %s921_s8, 1  ;;  %p46_p7 = scmp.eq.s32.totalorder %s43_s12, 0 }
  0x15   : > { %p1366_p8 = por %p227_p5, %p55_p1  ;;  %p924_p10 = scmp.ge.s32.totalorder %s1270_s29, 2 }
  0x16   : > { %p1373_p9 = por %p233_p6, %p61_p3  ;;  %p996_p11 = scmp.lt.s32.totalorder %s1270_s29, 2 }
  0x17   : > { %s1582_s13 = scalar_select %p1366_p8, 1, 0 }
  0x18   : > { %s1584_s14 = scalar_select %p1373_p9, 1, 0 }
  0x19   : > { %1583 = sst [smem:[#allocation19_spill]] %s1582_s13  ;;  %s1566_s16 = sand.u32 1, %s1258_s26  }
  0x1a   : > { %1585 = sst [smem:[#allocation20_spill]] %s1584_s14  ;;  %s1384_s17 = sshll.u32 %s1266_s28, 3 }
  0x1b   : > { %s1378_s15 = scalar_select %p46_p7, %s1258_s26, %s48_s10  }
  0x1c   : > { %s1388_s18 = sshll.u32 %s1566_s16, 3  ;;  %p1392_p12 = pnand %p996_p11, %p1359_p4 }
  0x1d   : > { %1586 = sst [smem:[#allocation21_spill]] %s1378_s15  ;;  %s298_s20 = sand.u32 1, %s1270_s29  }
  0x1e   : > { %s1588_s1 = sld [smem:[#allocation22_spill]]  ;;  %s302_s8 = scalar_lea.vmem [#allocation5], %s1388_s18 }
  0x1f   : > { %s313_s10 = sshll.u32 %s302_s8, 4  ;;  %s1402_s16 = scalar_lea.sflag [#allocation6], %s298_s20  ;;  %s314_s10 = int_to_ptr.vmem [resolvable:$true] %s313_s10 }
  0x20   : > { %p62_p13 = scmp.eq.s32.totalorder %s1347_s30, 0  ;;  %p922_p0 = scmp.ge.s32.totalorder %s1270_s29, 1 }
  0x21   : > { %p240_p1 = scmp.lt.s32.totalorder %s1270_s29, 3  ;;  %s1590_s3 = sld [smem:[#allocation23_spill]] }
  0x22   : > { %p1415_p2 = por %p62_p13, %p61_p3  ;;  %s1272_s8 = smov [#allocation8]  }
  0x23   : > { %p1422_p4 = pnand %p922_p0, %p240_p1  ;;  %s287_s22 = scalar_lea.hbm %s1558_s0, %s1384_s17 }
  0x24   : > { %s309_s23 = scalar_lea.hbm %s1588_s1, %s1384_s17  ;;  %s289_s1 = sshll.u32 %s287_s22, 4  ;;  %s290_s1 = int_to_ptr.hbm [resolvable:$true] %s289_s1 }
  0x25   : > { %s311_s12 = sshll.u32 %s309_s23, 4  ;;  %p977_p5 = pneg %p1422_p4  ;;  %s312_s12 = int_to_ptr.hbm [resolvable:$true] %s311_s12 }
  0x26   : > { %987 = dma.hbm_to_vmem [thread:$0]  (!%p1392_p12), %s312_s12, 128, %s314_s10, %s1402_s16  }
  0x27   : > { %s251_s23 = sshll.u32 %s1590_s3, 4  ;;  %s253_s10 = sshll.u32 %s1272_s8, 4  ;;  %s252_s23 = int_to_ptr.hbm [resolvable:$true] %s251_s23  ;;  %s254_s10 = int_to_ptr.vmem [resolvable:$true] %s253_s10 }
  0x28   : > { %p978_p3 = pnand %p977_p5, %p62_p13  ;;  %s1273_s3 = smov 64  }
  0x29   : > { %s1274_s9 = smov 4   ;;  %s280_s28 = scalar_lea.vmem [#allocation2], %s1388_s18 }
  0x2a   : > { %980 = dma.hbm_to_vmem [thread:$0]  (!%p978_p3), %s252_s23, 192, %s254_s10, [#allocation9], %s1273_s3, %s1273_s3, %s1274_s9  }
  0x2b   : > { %s291_s15 = sshll.u32 %s280_s28, 4  ;;  %s1592_s29 = sand.u32 1, %s1258_s26   ;;  %s292_s15 = int_to_ptr.vmem [resolvable:$true] %s291_s15 }
  0x2c   : > { %s277_s14 = scalar_lea.sflag [#allocation3], %s1592_s29  ;;  %s331_s13 = scalar_lea.hbm %s1560_s2, %s1384_s17 }
  0x2d   : > { %984 = dma.hbm_to_vmem [thread:$0]  (!%p1392_p12), %s290_s1, 128, %s292_s15, %s277_s14  }
  0x2e   : > { %s324_s12 = scalar_lea.vmem [#allocation7], %s1388_s18  ;;  %s333_s22 = sshll.u32 %s331_s13, 4  ;;  %s334_s22 = int_to_ptr.hbm [resolvable:$true] %s333_s22 }
  0x2f   : > { %s335_s21 = sshll.u32 %s324_s12, 4  ;;  %344 = sbr.rel (%p1422_p4) target bundleno = 426 (0x1aa), region = 48  ;;  %s336_s21 = int_to_ptr.vmem [resolvable:$true] %s335_s21 }
  0x30   : > { %990 = dma.hbm_to_vmem [thread:$0]  (!%p1392_p12), %s334_s22, 128, %s336_s21, %s1402_s16  }
  0x31   : > { %s1450_s3 = sand.u32 (!%p1422_p4), 1, %s1254_s25  }
  0x32   : > { %s1453_s1 = sshll.u32 (!%p1422_p4), %s1450_s3, 3  ;;  %s347_s24 = scalar_lea.sflag (!%p1422_p4), [#allocation3], %s1450_s3 }
  0x33   : > { %s350_s28 = scalar_lea.vmem (!%p1422_p4), [#allocation2], %s1453_s1 }
  0x34   : > { %1233 = dma.done.wait (%p1415_p2), %s347_s24, 128  }
  0x35   : > { %1235 = vsyncadd (%p1415_p2), %s347_s24, 4294967168  ;;  %s356_s29 = sand.u32 1, %s1347_s30   ;;  %s360_s13 = scalar_lea.vmem [#allocation5], %s1453_s1 }
  0x36   : > { %s357_s9 = scalar_lea.sflag [#allocation6], %s356_s29 }
  0x37   : > { %1237 = dma.done.wait (%p1415_p2), %s357_s9, 256  }
  0x38   : > { %1239 = vsyncadd (%p1415_p2), %s357_s9, 4294967040  ;;  %s370_s14 = scalar_lea.vmem [#allocation7], %s1453_s1 }
  0x39   : > { %1241 = dma.done.wait (%p62_p13), [#allocation9], 192  }
  0x3a   : > { %1243 = vsyncadd (%p62_p13), [#allocation9], 4294967104  ;;  %v1275_v0 = vmov 0   ;;  %v1472_v1 = vld [vmem:[%s360_s13] sm:$0xff]  ;;  %vm435_vm0 = vcmask 1043456   ;;  %v421_v3 = vld [vmem:[%s350_s28] sm:$0xff] }
  0x3b   : > { %1051 = vset.pattern.permute.xlu0 %v1275_v0  ;;  %428 = vst [vmem:[#allocation1] ss:$2 sm:$0xff] %v1472_v1  ;;  %v586_v2 = vld [vmem:[%s1562_s4] sm:$0xf]  ;;  %v426_v4 = vld [vmem:[#allocation8 + $0x4] sm:$0xf] }
  0x3c   : > { %589 = vperm.xlu0 %1051, %v586_v2   ;;  %vm431_vm1 = vcmask 31744   ;;  %v597_v5 = vld [vmem:[%s1564_s6] sm:$0x7]  ;;  %v1485_v8 = vld [vmem:[%s370_s14] sm:$0xff]  ;;  %v424_v9 = vld [vmem:[#allocation8] sm:$0xf] }
  0x3d   : > { %v532_v12 = vld [vmem:[#allocation8 + $0x8] sm:$0xf]  ;;  %vm654_vm2 = vcmask 1042432   ;;  %s964_s11 = sshll.u32 %s1262_s27, 3  ;;  %s416_s8 = scalar_lea.vmem [#allocation10], %s1453_s1 }
  0x3e   : > { %v596_v30 = vld [vmem:[%s1563_s5] sm:$0x7]  ;;  %s772_s10 = scalar_lea.hbm %s1565_s7, %s964_s11  ;;  %s774_s12 = sshll.u32 %s416_s8, 4  ;;  %s775_s12 = int_to_ptr.vmem [resolvable:$true] %s774_s12 }
  0x3f   : > { %s776_s21 = sshll.u32 %s772_s10, 4  ;;  %s759_s22 = scalar_lea.sflag [#allocation4], %s1450_s3  ;;  %s777_s21 = int_to_ptr.hbm [resolvable:$true] %s776_s21 }
  0x40   : > { %s1194_s24 = sshra.s32 %s777_s21, 4  ;;  %s1200_s1 = scalar_lea.hbm %s1565_s7, 16  ;;  %s1195_s24 = int_to_ptr.hbm [resolvable:$true] %s1194_s24 }
  0x41   : > { %s1196_s28 = scalar_lea.hbm %s1195_s24, 8  ;;  %p1201_p12 = scmp.lt.s32.totalorder %s1195_s24, %s1565_s7 }
  0x42   : > { %v429_v6 = vld.sshfl [vmem:[#allocation1] sm:$0xff pattern:$0x75316420]  ;;  %v430_v7 = vld.sshfl [vmem:[#allocation1 + $0x8] sm:$0xff pattern:$0x75316420]  ;;  %p1197_p6 = scmp.ne.s32.totalorder %s1195_s24, %s1196_s28  ;;  %p1202_p13 = scmp.lt.s32.totalorder %s1200_s1, %s1196_s28 }
  0x43   : > { %940 = vmatpush.msk.msra.mxu0 %vm435_vm0, %v429_v6  ;;  %942 = vmatpush.msk.msra.mxu1 %vm435_vm0, %v430_v7  ;;  %481 = vst [vmem:[#allocation1] ss:$2 sm:$0xff] %v421_v3 }
  0x44   : > { %941 = vmatmul.msk.f32.vlgmr.msra.gmra.mxu0 %vm431_vm1, %v426_v4  ;;  %943 = vmatmul.msk.f32.vlgmr.msra.gmra.mxu1 %vm431_vm1, %v426_v4  ;;  %p1198_p7 = pnand %p1197_p6, %p1366_p8  ;;  %p1203_p0 = por %p1202_p13, %p1201_p12 }
  0x45   : > { %600 = vperm.xlu0 %1051, %v597_v5  }
  0x46   : > { %p1199_p11 = pneg %p1198_p7 }
  0x48   : > { %p1204_p1 = pnand %p1203_p0, %p1199_p11 }
  0x4a   : > { %v482_v10 = vld.sshfl [vmem:[#allocation1] sm:$0xff pattern:$0x75316420]  ;;  %v483_v11 = vld.sshfl [vmem:[#allocation1 + $0x8] sm:$0xff pattern:$0x75316420] }
  0x4b   : > { %944 = vmatpush.msk.msra.mxu2 %vm435_vm0, %v482_v10  ;;  %946 = vmatpush.msk.msra.mxu3 %vm435_vm0, %v483_v11  ;;  %534 = vst [vmem:[#allocation1] ss:$2 sm:$0xff] %v1485_v8 }
  0x4c   : > { %945 = vmatmul.msk.f32.vlgmr.msra.gmra.mxu2 %vm431_vm1, %v424_v9  ;;  %947 = vmatmul.msk.f32.vlgmr.msra.gmra.mxu3 %vm431_vm1, %v424_v9 }
  0x52   : > { %v535_v13 = vld.sshfl [vmem:[#allocation1] sm:$0xff pattern:$0x75316420]  ;;  %v536_v14 = vld.sshfl [vmem:[#allocation1 + $0x8] sm:$0xff pattern:$0x75316420] }
  0x53   : > { %948 = vmatpush.msk.msrb.mxu0 %vm435_vm0, %v535_v13  ;;  %950 = vmatpush.msk.msrb.mxu1 %vm435_vm0, %v536_v14  ;;  %723 = vst [vmem:[#allocation1] ss:$2 sm:$0xff] %v421_v3 }
  0x54   : > { %949 = vmatmul.msk.f32.vlgmr.msrb.gmra.mxu0 %vm431_vm1, %v532_v12  ;;  %951 = vmatmul.msk.f32.vlgmr.msrb.gmra.mxu1 %vm431_vm1, %v532_v12 }
  0x5a   : > { %v1505_v52 = vld.sshfl [vmem:[#allocation1] sm:$0xff pattern:$0x75316420]  ;;  %v1507_v53 = vld.sshfl [vmem:[#allocation1 + $0x8] sm:$0xff pattern:$0x75316420] }
  0x5b   : > { %732 = vst [vmem:[#allocation1] ss:$2 sm:$0xff] %v1472_v1 }
  0x62   : > { %v733_v58 = vld.sshfl [vmem:[#allocation1] sm:$0xff pattern:$0x75316420]  ;;  %v1510_v59 = vld.sshfl [vmem:[#allocation1 + $0x8] sm:$0xff pattern:$0x75316420] }
  0x63   : > { %743 = vst [vmem:[#allocation1] ss:$2 sm:$0xff] %v1485_v8 }
  0xae   : > { %v590_v25 = vpop.permute.xlu0 %589 }
  0xb7   : > { %v601_v31 = vpop.permute.xlu0 %600 }
  0xc1   : > { %v457_v15 = vpop.f32.mrf.mxu0  ;;  %v477_v16 = vpop.f32.mrf.mxu1 }
  0xcf   : > { %v508_v17 = vpop.f32.mrf.mxu2  ;;  %v528_v18 = vpop.f32.mrf.mxu3 }
  0xd0   : > { %v509_v19 = vadd.f32 %v508_v17, %v457_v15  ;;  %v529_v20 = vadd.f32 %v528_v18, %v477_v16 }
  0xd1   : > { %v561_v21 = vpop.f32.mrf.mxu0  ;;  %v581_v22 = vpop.f32.mrf.mxu1 }
  0xd2   : > { %v584_v23 = vadd.f32 %v561_v21, %v509_v19  ;;  %v585_v24 = vadd.f32 %v581_v22, %v529_v20 }
  0xd4   : > { %v592_v26 = vadd.f32 %v590_v25, %v584_v23  ;;  %v593_v27 = vadd.f32 %v590_v25, %v585_v24 }
  0xd6   : > { %v594_v28 = vmax.f32 %v592_v26, 0.0  ;;  %v595_v29 = vmax.f32 %v593_v27, 0.0 }
  0xd8   : > { %952 = vmatpush.msk.msrb.mxu2 %vm435_vm0, %v594_v28  ;;  %954 = vmatpush.msk.msrb.mxu3 %vm435_vm0, %v595_v29 }
  0xd9   : > { %953 = vmatmul.msk.f32.vlgmr.msrb.gmra.mxu2 %vm431_vm1, %v596_v30  ;;  %955 = vmatmul.msk.f32.vlgmr.msrb.gmra.mxu3 %vm431_vm1, %v596_v30 }
 0x15c   : > { %v629_v32 = vpop.f32.mrf.mxu2  ;;  %v649_v33 = vpop.f32.mrf.mxu3 }
 0x15d   : > { %v630_v34 = vadd.f32 %v629_v32, %v601_v31  ;;  %v650_v35 = vadd.f32 %v649_v33, %v601_v31 }
 0x15f   : > { %v652_v36 = vmax.f32 %v630_v34, 0.0  ;;  %v653_v37 = vmax.f32 %v650_v35, 0.0 }
 0x161   : > { %v655_v38 = vsel %vm654_vm2, %v652_v36, -inf  ;;  %v662_v39 = vsel %vm654_vm2, %v653_v37, -inf }
 0x162   : > { %v656_v40 = vrot.slane %v655_v38, 4  ;;  %v663_v41 = vrot.slane %v662_v39, 4 }
 0x164   : > { %v657_v42 = vmax.f32 %v655_v38, %v656_v40  ;;  %v664_v43 = vmax.f32 %v662_v39, %v663_v41 }
 0x166   : > { %v658_v44 = vrot.slane %v657_v42, 2  ;;  %v665_v45 = vrot.slane %v664_v43, 2 }
 0x168   : > { %v659_v46 = vmax.f32 %v657_v42, %v658_v44  ;;  %v666_v47 = vmax.f32 %v664_v43, %v665_v45  ;;  %v745_v43 = vld.sshfl [vmem:[#allocation1 + $0x8] sm:$0xff pattern:$0x75316420] }
 0x16a   : > { %v660_v48 = vrot.slane %v659_v46, 1  ;;  %v667_v49 = vrot.slane %v666_v47, 1 }
 0x16c   : > { %v661_v50 = vmax.f32 %v659_v46, %v660_v48  ;;  %v668_v51 = vmax.f32 %v666_v47, %v667_v49  ;;  %v744_v47 = vld.sshfl [vmem:[#allocation1] sm:$0xff pattern:$0x75316420] }
 0x16e   : > { %v669_v54 = vsub.f32 %v652_v36, %v661_v50  ;;  %v670_v55 = vsub.f32 %v653_v37, %v668_v51 }
 0x170   : > { %v671_v56 = vmul.f32 1.442695, %v669_v54  ;;  %v673_v57 = vmul.f32 1.442695, %v670_v55 }
 0x172   : > { %1052 = vpow2.f32 %v671_v56 }
 0x173   : > { %1054 = vpow2.f32 %v673_v57 }
 0x178   : > { %v1053_v60 = vpop.eup %1052 }
 0x179   : > { %v1055_v61 = vpop.eup %1054  ;;  %v675_v62 = vsel %vm654_vm2, %v1053_v60, 0.0 }
 0x17a   : > { %v676_v63 = vrot.slane %v675_v62, 4  ;;  %v682_v0 = vsel %vm654_vm2, %v1055_v61, 0.0 }
 0x17b   : > { %v683_v2 = vrot.slane %v682_v0, 4 }
 0x17c   : > { %v677_v3 = vadd.f32 %v676_v63, %v675_v62 }
 0x17d   : > { %v684_v4 = vadd.f32 %v683_v2, %v682_v0 }
 0x17e   : > { %v678_v1 = vrot.slane %v677_v3, 2 }
 0x17f   : > { %v685_v5 = vrot.slane %v684_v4, 2 }
 0x180   : > { %v679_v6 = vadd.f32 %v678_v1, %v677_v3 }
 0x181   : > { %v686_v7 = vadd.f32 %v685_v5, %v684_v4 }
 0x182   : > { %v680_v9 = vrot.slane %v679_v6, 1 }
 0x183   : > { %v687_v10 = vrot.slane %v686_v7, 1 }
 0x184   : > { %v681_v11 = vadd.f32 %v680_v9, %v679_v6 }
 0x185   : > { %v688_v12 = vadd.f32 %v687_v10, %v686_v7 }
 0x186   : > { %1056 = vrcp.f32 %v681_v11  ;;  %v700_v17 = vand.u32 2147483648, %v681_v11  ;;  %v698_v20 = vand.u32 2147483647, %v681_v11  ;;  %vm694_vm5 = vweird.f32 %v681_v11 }
 0x187   : > { %1058 = vrcp.f32 %v688_v12  ;;  %v715_v21 = vand.u32 2147483648, %v688_v12  ;;  %v713_v23 = vand.u32 2147483647, %v688_v12  ;;  %vm709_vm7 = vweird.f32 %v688_v12 }
 0x188   : > { %v701_v25 = vor.u32 1.1754944e-38, %v700_v17  ;;  %vm699_vm8 = vcmp.eq.f32.partialorder %v698_v20, 8.507059e+37 }
 0x189   : > { %v716_v28 = vor.u32 1.1754944e-38, %v715_v21  ;;  %vm714_vm10 = vcmp.eq.f32.partialorder %v713_v23, 8.507059e+37 }
 0x18c   : > { %v1057_v8 = vpop.eup %1056 }
 0x18d   : > { %v1059_v13 = vpop.eup %1058  ;;  %v690_v14 = vmul.f32 %v1057_v8, %v681_v11  ;;  %vm695_vm3 = vweird.f32 %v1057_v8 }
 0x18e   : > { %v705_v15 = vmul.f32 %v1059_v13, %v688_v12  ;;  %vm710_vm4 = vweird.f32 %v1059_v13  ;;  %vm696_vm6 = vmor %vm694_vm5, %vm695_vm3 }
 0x18f   : > { %v691_v16 = vsub.f32 1.0, %v690_v14  ;;  %vm711_vm9 = vmor %vm709_vm7, %vm710_vm4 }
 0x190   : > { %v706_v18 = vsub.f32 1.0, %v705_v15 }
 0x191   : > { %v692_v19 = vmul.f32 %v1057_v8, %v691_v16 }
 0x192   : > { %v707_v22 = vmul.f32 %v1059_v13, %v706_v18 }
 0x193   : > { %v693_v24 = vadd.f32 %v1057_v8, %v692_v19 }
 0x194   : > { %v708_v26 = vadd.f32 %v1059_v13, %v707_v22 }
 0x195   : > { %v697_v27 = vsel %vm696_vm6, %v1057_v8, %v693_v24 }
 0x196   : > { %v702_v29 = vsel %vm699_vm8, %v701_v25, %v697_v27  ;;  %v712_v30 = vsel %vm711_vm9, %v1059_v13, %v708_v26 }
 0x197   : > { %v703_v31 = vmul.f32 0.33333334, %v702_v29  ;;  %v717_v32 = vsel %vm714_vm10, %v716_v28, %v712_v30 }
 0x198   : > { %v718_v33 = vmul.f32 0.33333334, %v717_v32 }
 0x199   : > { %v719_v34 = vmul.f32 %v1053_v60, %v703_v31 }
 0x19a   : > { %v720_v35 = vmul.f32 %v1055_v61, %v718_v33 }
 0x19b   : > { %v721_v36 = vperm.slane %v719_v34, 0  ;;  %v730_v37 = vperm.slane %v719_v34, 1  ;;  %v741_v44 = vperm.slane %v719_v34, 2 }
 0x19c   : > { %v722_v38 = vperm.slane %v720_v35, 0  ;;  %v731_v39 = vperm.slane %v720_v35, 1  ;;  %v742_v40 = vperm.slane %v720_v35, 2 }
 0x19d   : > { %v728_v41 = vmul.f32 %v1505_v52, %v721_v36  ;;  %v737_v42 = vmul.f32 %v733_v58, %v730_v37  ;;  %v748_v51 = vmul.f32 %v744_v47, %v741_v44 }
 0x19e   : > { %v729_v45 = vmul.f32 %v1507_v53, %v722_v38  ;;  %v738_v46 = vmul.f32 %v1510_v59, %v731_v39  ;;  %v749_v50 = vmul.f32 %v745_v43, %v742_v40 }
 0x19f   : > { %v739_v48 = vadd.f32 %v737_v42, %v728_v41 }
 0x1a0   : > { %v740_v49 = vadd.f32 %v738_v46, %v729_v45 }
 0x1a1   : > { %v750_v52 = vadd.f32 %v748_v51, %v739_v48 }
 0x1a2   : > { %v751_v54 = vadd.f32 %v749_v50, %v740_v49 }
 0x1a4   : > { %v754_v55 = vrot.slane %v751_v54, 4 }
 0x1a6   : > { %v755_v53 = vsel %vm435_vm0, %v750_v52, %v754_v55 }
 0x1a7   : > { %757 = vst [vmem:[%s416_s8] sm:$0xff] %v755_v53 }
 0x1a8   : > { %1207 = shalt.err (!%p1204_p1)
}
 0x1a9   : > { %975 = dma.vmem_to_hbm [thread:$0]  (%p1366_p8), %s775_s12, 128, %s777_s21, %s759_s22  }
 0x1aa PF: > { %s1594_s3 = sld [smem:[#allocation15_spill]]  ;;  %p992_p2 = pnand %p924_p10, %p1373_p9 }
 0x1ab   : > { %s1596_s16 = sld [smem:[#allocation17_spill]] }
 0x1ac   : > { %p993_p4 = pneg %p992_p2 }
 0x1b0   : > { %s788_s17 = sand.u32 1, %s1594_s3  }
 0x1b1   : > { %s789_s18 = scalar_lea.sflag [#allocation4], %s788_s17 }
 0x1b2   : > { %1245 = dma.done.wait (%p993_p4), %s789_s18, 128  }
 0x1b3   : > { %1247 = vsyncadd (%p993_p4), %s789_s18, 4294967168  ;;  %s27_s29 = sadd.s32 1, %s1596_s16   ;;  %s1597_s30 = sld [smem:[#allocation21_spill]] }
 0x1b4   : > { %p24_p5 = scmp.ge.s32.totalorder %s27_s29, 4   ;;  %s1598_s27 = sld [smem:[#allocation16_spill]] }
 0x1b5   : > { %s1599_s28 = sld [smem:[#allocation18_spill]]  ;;  %s1600_s24 = smov %s1254_s25 }
 0x1b6   : > { %s1601_s25 = smov %s1258_s26  ;;  %26 = sbr.rel (!%p24_p5) target bundleno = 12 (0xc), region = 123 }
 0x1b9   : > { %s1602_s26 = smov %s1597_s30 }
 0x1bb   :  { %795 = vsyncpa [#allocation3], 1 }
 0x1bc   :  { %797 = vsyncpa [#allocation3 + $0x1], 1 }
 0x1bd   :  { %798 = vsyncpa [#allocation6], 1 }
 0x1be   :  { %800 = vsyncpa [#allocation6 + $0x1], 1 }
 0x1bf   :  { %801 = vsyncpa [#allocation9], 1 }
 0x1c0   :  { %802 = vsyncpa [#allocation4], 1 }
 0x1c1   :  { %804 = vsyncpa [#allocation4 + $0x1], 1 }

</bundles_post_ra>
